<compile_context>
chip_gen: v7x
topology: tpu7x:2x2x1
jax: 0.10.0
libtpu: 0.0.40
codegen_flags: <defaults>
</compile_context>

<pallas_src>
import functools

import jax
import jax.numpy as jnp
from jax.experimental import pallas as pl
from jax.experimental.pallas import tpu as pltpu


def _round_up(x, m):
    return ((x + m - 1) // m) * m


def _const_spec(shape):
    """BlockSpec for an operand that is identical for every grid step.

    Single-buffered when supported: these blocks never change across the grid,
    so double-buffering them only wastes VMEM that could hold a larger enc tile.
    """
    index_map = lambda *_: (0,) * len(shape)
    try:
        return pl.BlockSpec(shape, index_map, pipeline_mode=pl.Buffered(1))
    except Exception:  # older jax without the pipeline_mode kwarg
        return pl.BlockSpec(shape, index_map)


def attention_kernel(enc_ref, dec_ref, w_enc_ref, w_dec_ref, b_ref, v_ref,
                     *rest, s_len, tanh_dtype, need_expand, need_mask):
    out_ref = rest[-1]
    expand_ref = rest[0] if need_expand else None

    tb, s_k, two_h = enc_ref.shape
    h = w_enc_ref.shape[1]

    # Decoder row-bias: ((h0+h1+h2) @ w_dec) + b, shared across all src positions.
    dec_bias = jnp.dot(dec_ref[...], w_dec_ref[...],
                       preferred_element_type=jnp.float32) + b_ref[...]      # [TB,H] f32

    # Encoder projection: ONE flattened 2-D MXU matmul.  S_k is padded to the
    # dtype packing multiple, so this reshape is a free relayout.
    enc_proj = jnp.dot(enc_ref[...].reshape(tb * s_k, two_h), w_enc_ref[...],
                       preferred_element_type=jnp.float32)                   # [TB*S_k,H]
    pre = enc_proj.reshape(tb, s_k, h) + dec_bias[:, None, :]                # f32

    # tanh on the EUP; bf16 on v6e/v7x (f32 on older gens without bf16 EUP).
    energy = jnp.tanh(pre.astype(tanh_dtype))                                # [TB,S_k,H]

    # v projection (H -> 1, no bias): VPU mul in the tanh dtype, f32 lane reduce.
    v_row = v_ref[...].reshape(1, 1, h)                                      # tanh dtype
    scores = jnp.sum((energy * v_row).astype(jnp.float32), axis=2)           # [TB,S_k]

    # Mask the S padding (positions >= s_len) BEFORE the softmax so exp -> 0.
    if need_mask:
        lane = jax.lax.broadcasted_iota(jnp.int32, scores.shape, 1)
        scores = jnp.where(lane < s_len, scores, -1e30)

    # Softmax over src_len (dim=1); exact normalization ([TB,1] reciprocal).
    m = jnp.max(scores, axis=1, keepdims=True)
    e = jnp.exp(scores - m)
    denom = jnp.sum(e, axis=1, keepdims=True)
    probs = e * pl.reciprocal(denom)                                         # exact

    if need_expand:
        # Widen [TB,S_k] -> [TB,S_out] (zero fill past S_k) with a tiny MXU
        # matmul so the write-back is one unmasked, lane-dense full-width store.
        out_ref[...] = jnp.dot(probs, expand_ref[...],
                               preferred_element_type=jnp.float32)
    else:
        out_ref[...] = probs


@jax.jit
def attention_forward(encoder_outputs, decoder_hidden, w_attn, b_attn, w_v):
    """encoder_outputs: [B, S, 2H] (bf16 recommended), decoder_hidden: [L>=3, B, 2H],
       w_attn: [H, 4H] (PyTorch Linear layout), b_attn: [H], w_v: [1, H]."""
    B, S, two_h = encoder_outputs.shape
    H = two_h // 2
    in_dtype = encoder_outputs.dtype
    itemsize = jnp.dtype(in_dtype).itemsize

    # ---- device-aware knobs (trace-time Python) -----------------------------
    try:
        vmem_cap = int(pltpu.get_tpu_info().vmem_capacity_bytes)
    except Exception:
        vmem_cap = 64 << 20                       # conservative fallback
    device_kind = jax.devices()[0].device_kind.lower()
    old_gen = any(t in device_kind for t in ("v2", "v3", "v4", "v5"))
    is_v7 = ("v7" in device_kind) or ("7x" in device_kind)
    tanh_dtype = (jnp.bfloat16
                  if (in_dtype == jnp.bfloat16 and not old_gen) else jnp.float32)
    tanh_size = jnp.dtype(tanh_dtype).itemsize

    # ---- weight / activation prep (fused under jit) --------------------------
    w_t = w_attn.T.astype(in_dtype)               # [4H, H]
    w_enc = w_t[:two_h]                           # [2H, H] -> encoder half of cat
    w_dec = w_t[two_h:]                           # [2H, H] -> decoder half of cat
    b = b_attn.reshape(1, H).astype(jnp.float32)
    v = w_v.reshape(1, H).astype(tanh_dtype)
    # PyTorch uses exactly h[0]+h[1]+h[2]; pre-sum so the kernel streams [B,2H].
    dec_sum = (decoder_hidden[0] + decoder_hidden[1]
               + decoder_hidden[2]).astype(in_dtype)

    # ---- pad S to the dtype packing multiple (flattened-matmul fast path) ----
    pack = 16 if itemsize == 2 else 8
    S_k = max(_round_up(S, pack), pack)
    if S_k != S:
        encoder_outputs = jnp.pad(encoder_outputs, ((0, 0), (0, S_k - S), (0, 0)))
    S_out = _round_up(S_k, 128)                   # lane-dense output width
    need_expand = S_out != S_k
    need_mask = S_k != S
    expand = jnp.eye(S_k, S_out, dtype=jnp.float32) if need_expand else None

    # ---- batch tile sized against the VMEM limit actually requested ----------
    vmem_limit = min(int(vmem_cap * 3 // 4), 112 << 20)   # ~96 MiB v5e/v6e, ~48 MiB v7x
    resident = (2 * two_h * H * itemsize                  # w_enc + w_dec (single-buffered)
                + H * (4 + tanh_size)                     # bias + v
                + (S_k * S_out * 4 if need_expand else 0))
    per_row = (2 * S_k * two_h * itemsize                 # enc block (double-buffered)
               + 2 * two_h * itemsize                     # dec_sum block (double-buffered)
               + 2 * S_out * 4                            # out block (double-buffered)
               + S_k * H * (8 + 2 * tanh_size)            # enc_proj/pre (f32) + energy/prod
               + S_k * H * 4                              # f32 copy for the lane reduce
               + 6 * S_k * 4 + 2 * H * 4)                 # softmax temps, dec_bias
    budget = int(vmem_limit * 0.8) - resident             # headroom for compiler scratch
    row_align = 16 if itemsize == 2 else 8
    tb = max(1, budget // max(per_row, 1))
    if is_v7:
        # keep >= 2 grid steps so the "parallel" batch axis shards across both TCs
        tb = min(tb, _round_up(pl.cdiv(B, 2), row_align))
    if tb >= B:
        tb = B
    else:
        tb = max(row_align, (tb // row_align) * row_align)

    grid = (pl.cdiv(B, tb),)
    in_specs = [
        pl.BlockSpec((tb, S_k, two_h), lambda i: (i, 0, 0)),  # enc: streamed
        pl.BlockSpec((tb, two_h), lambda i: (i, 0)),          # dec pre-sum: streamed
        _const_spec((two_h, H)),                              # w_enc (VMEM-resident)
        _const_spec((two_h, H)),                              # w_dec (VMEM-resident)
        _const_spec((1, H)),                                  # bias
        _const_spec((1, H)),                                  # v
    ]
    args = [encoder_outputs, dec_sum, w_enc, w_dec, b, v]
    if need_expand:
        in_specs.append(_const_spec((S_k, S_out)))            # identity widener
        args.append(expand)

    grid_spec = pltpu.PrefetchScalarGridSpec(
        num_scalar_prefetch=0,
        grid=grid,
        in_specs=in_specs,
        out_specs=pl.BlockSpec((tb, S_out), lambda i: (i, 0)),  # lane-dense slab
    )

    out_padded = pl.pallas_call(
        functools.partial(attention_kernel, s_len=S, tanh_dtype=tanh_dtype,
                          need_expand=need_expand, need_mask=need_mask),
        out_shape=jax.ShapeDtypeStruct((B, S_out), jnp.float32),
        grid_spec=grid_spec,
        compiler_params=pltpu.CompilerParams(
            dimension_semantics=("parallel",),
            vmem_limit_bytes=int(vmem_limit),
        ),
    )(*args)
    return out_padded[:, :S]


def attention_reference(encoder_outputs, decoder_hidden, w_attn, b_attn, w_v):
    """Pure-JAX f32 reference mirroring the PyTorch forward."""
    B, S, two_h = encoder_outputs.shape
    dec = decoder_hidden[0] + decoder_hidden[1] + decoder_hidden[2]      # [B, 2H]
    dec = jnp.broadcast_to(dec[:, None, :], (B, S, two_h))
    cat = jnp.concatenate([encoder_outputs, dec], axis=2)                # [B,S,4H]
    energy = jnp.tanh(cat @ w_attn.T + b_attn)                           # [B,S,H]
    attn = (energy @ w_v.T)[..., 0]                                      # [B, S]
    return jax.nn.softmax(attn, axis=1)


if __name__ == "__main__":
    B, S, H = 2, 8, 32
    key = jax.random.PRNGKey(0)
    k_enc, k_dec, k_w, k_b, k_v = jax.random.split(key, 5)

    enc_f32 = jax.random.normal(k_enc, (B, S, 2 * H), dtype=jnp.float32)
    dec_f32 = jax.random.normal(k_dec, (3, B, 2 * H), dtype=jnp.float32)
    w_attn = jax.random.normal(k_w, (H, 4 * H), dtype=jnp.float32) * 0.1
    b_attn = jax.random.normal(k_b, (H,), dtype=jnp.float32) * 0.1
    w_v = jax.random.normal(k_v, (1, H), dtype=jnp.float32) * 0.1

    # Feed bf16 activations (halves HBM traffic; MXU is natively bf16).
    enc = enc_f32.astype(jnp.bfloat16)
    dec = dec_f32.astype(jnp.bfloat16)

    out = attention_forward(enc, dec, w_attn, b_attn, w_v)
    out = jax.block_until_ready(out)

    # Reference in f32 on the bf16-rounded operands the kernel actually sees.
    ref = attention_reference(
        enc.astype(jnp.float32), dec.astype(jnp.float32),
        w_attn.astype(jnp.bfloat16).astype(jnp.float32), b_attn, w_v)

    assert out.shape == (B, S)
    assert jnp.allclose(out, ref, atol=2.5e-2), "mismatch vs reference"
    assert jnp.allclose(jnp.sum(out, axis=1), 1.0, atol=1e-3), "softmax not normalized"
    print("KERNEL_OK")
</pallas_src>

<mosaic_0001>
module attributes {stable_mosaic.version = 11 : i64} {
  func.func @attention_kernel(%arg0: i32, %arg1: memref<2x16x64xbf16, #tpu.memory_space<vmem>>, %arg2: memref<2x64xbf16, #tpu.memory_space<vmem>>, %arg3: memref<64x32xbf16, #tpu.memory_space<vmem>>, %arg4: memref<64x32xbf16, #tpu.memory_space<vmem>>, %arg5: memref<1x32xf32, #tpu.memory_space<vmem>>, %arg6: memref<1x32xbf16, #tpu.memory_space<vmem>>, %arg7: memref<16x128xf32, #tpu.memory_space<vmem>>, %arg8: memref<2x128xf32, #tpu.memory_space<vmem>>) attributes {dimension_semantics = [#tpu.dimension_semantics<parallel>], iteration_bounds = array<i64: 1>, scalar_prefetch = 0 : i64, scratch_operands = 0 : i64, tpu.core_type = #tpu.core_type<tc>, window_params = [{transform_indices = @transform_0, window_bounds = array<i64: 2, 16, 64>}, {transform_indices = @transform_1, window_bounds = array<i64: 2, 64>}, {pipeline_mode = #tpu.pipeline_mode<synchronous>, transform_indices = @transform_2, window_bounds = array<i64: 64, 32>}, {pipeline_mode = #tpu.pipeline_mode<synchronous>, transform_indices = @transform_3, window_bounds = array<i64: 64, 32>}, {pipeline_mode = #tpu.pipeline_mode<synchronous>, transform_indices = @transform_4, window_bounds = array<i64: 1, 32>}, {pipeline_mode = #tpu.pipeline_mode<synchronous>, transform_indices = @transform_5, window_bounds = array<i64: 1, 32>}, {pipeline_mode = #tpu.pipeline_mode<synchronous>, transform_indices = @transform_6, window_bounds = array<i64: 16, 128>}, {transform_indices = @transform_7, window_bounds = array<i64: 2, 128>}]} {
    %c0 = arith.constant 0 : index
    %c0_0 = arith.constant 0 : index
    %0 = vector.load %arg2[%c0, %c0_0] : memref<2x64xbf16, #tpu.memory_space<vmem>>, vector<2x64xbf16>
    %c0_1 = arith.constant 0 : index
    %c0_2 = arith.constant 0 : index
    %1 = vector.load %arg4[%c0_1, %c0_2] : memref<64x32xbf16, #tpu.memory_space<vmem>>, vector<64x32xbf16>
    %cst = arith.constant dense<0.000000e+00> : vector<2x32xf32>
    %2 = tpu.matmul %0, %1, %cst {dimension_numbers = #tpu.dot_dimension_numbers<[1], [0], [0], [1], [0, 0, 1, 1], [], []>} : vector<2x64xbf16>, vector<64x32xbf16>, vector<2x32xf32> -> vector<2x32xf32>
    %c0_3 = arith.constant 0 : index
    %c0_4 = arith.constant 0 : index
    %3 = vector.load %arg5[%c0_3, %c0_4] : memref<1x32xf32, #tpu.memory_space<vmem>>, vector<1x32xf32>
    %4 = vector.broadcast %3 : vector<1x32xf32> to vector<2x32xf32>
    %5 = arith.addf %2, %4 : vector<2x32xf32>
    %c0_5 = arith.constant 0 : index
    %c0_6 = arith.constant 0 : index
    %c0_7 = arith.constant 0 : index
    %6 = vector.load %arg1[%c0_5, %c0_6, %c0_7] : memref<2x16x64xbf16, #tpu.memory_space<vmem>>, vector<2x16x64xbf16>
    %7 = vector.shape_cast %6 : vector<2x16x64xbf16> to vector<32x64xbf16>
    %c0_8 = arith.constant 0 : index
    %c0_9 = arith.constant 0 : index
    %8 = vector.load %arg3[%c0_8, %c0_9] : memref<64x32xbf16, #tpu.memory_space<vmem>>, vector<64x32xbf16>
    %cst_10 = arith.constant dense<0.000000e+00> : vector<32x32xf32>
    %9 = tpu.matmul %7, %8, %cst_10 {dimension_numbers = #tpu.dot_dimension_numbers<[1], [0], [0], [1], [0, 0, 1, 1], [], []>} : vector<32x64xbf16>, vector<64x32xbf16>, vector<32x32xf32> -> vector<32x32xf32>
    %10 = vector.shape_cast %9 : vector<32x32xf32> to vector<2x16x32xf32>
    %11 = vector.shape_cast %5 : vector<2x32xf32> to vector<2x1x32xf32>
    %12 = vector.broadcast %11 : vector<2x1x32xf32> to vector<2x16x32xf32>
    %13 = arith.addf %10, %12 : vector<2x16x32xf32>
    %14 = arith.truncf %13 : vector<2x16x32xf32> to vector<2x16x32xbf16>
    %15 = math.tanh %14 : vector<2x16x32xbf16>
    %c0_11 = arith.constant 0 : index
    %c0_12 = arith.constant 0 : index
    %16 = vector.load %arg6[%c0_11, %c0_12] : memref<1x32xbf16, #tpu.memory_space<vmem>>, vector<1x32xbf16>
    %17 = vector.shape_cast %16 : vector<1x32xbf16> to vector<1x1x32xbf16>
    %18 = vector.broadcast %17 : vector<1x1x32xbf16> to vector<2x16x32xbf16>
    %19 = arith.mulf %15, %18 : vector<2x16x32xbf16>
    %20 = arith.extf %19 : vector<2x16x32xbf16> to vector<2x16x32xf32>
    %cst_13 = arith.constant dense<0.000000e+00> : vector<2x16xf32>
    %21 = vector.multi_reduction <add>, %20, %cst_13 [2] : vector<2x16x32xf32> to vector<2x16xf32>
    %22 = tpu.iota {dimensions = array<i32: 1>} : vector<2x16xi32>
    %c8_i32 = arith.constant 8 : i32
    %23 = vector.broadcast %c8_i32 : i32 to vector<2x16xi32>
    %24 = arith.cmpi slt, %22, %23 : vector<2x16xi32>
    %cst_14 = arith.constant -1.000000e+30 : f32
    %25 = vector.broadcast %cst_14 : f32 to vector<2x16xf32>
    %26 = arith.select %24, %21, %25 : vector<2x16xi1>, vector<2x16xf32>
    %cst_15 = arith.constant dense<0xFF800000> : vector<2xf32>
    %27 = vector.multi_reduction <maximumf>, %26, %cst_15 [1] : vector<2x16xf32> to vector<2xf32>
    %28 = vector.shape_cast %27 : vector<2xf32> to vector<2x1xf32>
    %29 = vector.broadcast %28 : vector<2x1xf32> to vector<2x16xf32>
    %30 = arith.subf %26, %29 : vector<2x16xf32>
    %31 = math.exp %30 : vector<2x16xf32>
    %cst_16 = arith.constant dense<0.000000e+00> : vector<2xf32>
    %32 = vector.multi_reduction <add>, %31, %cst_16 [1] : vector<2x16xf32> to vector<2xf32>
    %33 = vector.shape_cast %32 : vector<2xf32> to vector<2x1xf32>
    %34 = tpu.reciprocal %33 : vector<2x1xf32> -> vector<2x1xf32>
    %35 = vector.broadcast %34 : vector<2x1xf32> to vector<2x16xf32>
    %36 = arith.mulf %31, %35 : vector<2x16xf32>
    %c0_17 = arith.constant 0 : index
    %c0_18 = arith.constant 0 : index
    %37 = vector.load %arg7[%c0_17, %c0_18] : memref<16x128xf32, #tpu.memory_space<vmem>>, vector<16x128xf32>
    %cst_19 = arith.constant dense<0.000000e+00> : vector<2x128xf32>
    %38 = tpu.matmul %36, %37, %cst_19 {dimension_numbers = #tpu.dot_dimension_numbers<[1], [0], [0], [1], [0, 0, 1, 1], [], []>} : vector<2x16xf32>, vector<16x128xf32>, vector<2x128xf32> -> vector<2x128xf32>
    %c0_20 = arith.constant 0 : index
    %c0_21 = arith.constant 0 : index
    %39 = vector.load %arg8[%c0_20, %c0_21] : memref<2x128xf32, #tpu.memory_space<vmem>>, vector<2x128xf32>
    tpu.vector_store %arg8[%c0_20, %c0_21], %38 {strides = array<i32>} : memref<2x128xf32, #tpu.memory_space<vmem>>, vector<2x128xf32>,
    return
  }
  func.func @transform_0(%arg0: i32) -> (i32, i32, i32) {
    %c0_i32 = arith.constant 0 : i32
    %c0_i32_0 = arith.constant 0 : i32
    %c0_i32_1 = arith.constant 0 : i32
    return %arg0, %c0_i32, %c0_i32_0 : i32, i32, i32
  }
  func.func @transform_1(%arg0: i32) -> (i32, i32) {
    %c0_i32 = arith.constant 0 : i32
    %c0_i32_0 = arith.constant 0 : i32
    return %arg0, %c0_i32 : i32, i32
  }
  func.func @transform_2(%arg0: i32) -> (i32, i32) {
    %c0_i32 = arith.constant 0 : i32
    %c0_i32_0 = arith.constant 0 : i32
    %c0_i32_1 = arith.constant 0 : i32
    return %c0_i32, %c0_i32_0 : i32, i32
  }
  func.func @transform_3(%arg0: i32) -> (i32, i32) {
    %c0_i32 = arith.constant 0 : i32
    %c0_i32_0 = arith.constant 0 : i32
    %c0_i32_1 = arith.constant 0 : i32
    return %c0_i32, %c0_i32_0 : i32, i32
  }
  func.func @transform_4(%arg0: i32) -> (i32, i32) {
    %c0_i32 = arith.constant 0 : i32
    %c0_i32_0 = arith.constant 0 : i32
    %c0_i32_1 = arith.constant 0 : i32
    return %c0_i32, %c0_i32_0 : i32, i32
  }
  func.func @transform_5(%arg0: i32) -> (i32, i32) {
    %c0_i32 = arith.constant 0 : i32
    %c0_i32_0 = arith.constant 0 : i32
    %c0_i32_1 = arith.constant 0 : i32
    return %c0_i32, %c0_i32_0 : i32, i32
  }
  func.func @transform_6(%arg0: i32) -> (i32, i32) {
    %c0_i32 = arith.constant 0 : i32
    %c0_i32_0 = arith.constant 0 : i32
    %c0_i32_1 = arith.constant 0 : i32
    return %c0_i32, %c0_i32_0 : i32, i32
  }
  func.func @transform_7(%arg0: i32) -> (i32, i32) {
    %c0_i32 = arith.constant 0 : i32
    %c0_i32_0 = arith.constant 0 : i32
    return %arg0, %c0_i32 : i32, i32
  }
}

</mosaic_0001>

<bundles_post_ra>
// kernel: attention_forward.1
= control target key start
LH: loop header
LB: loop body
LE: loop exit
PB: predicated region body
PF: predicated region fallthrough
CT: control target
= control target key end

     0   :  { %v525_v1 = vmov 0.0   ;;  %vm526_vm0 = vmmov 0   ;;  %vm68_vm1 = vcmask 523264   ;;  %s629_s0 = inlined_call_operand.vmem [shape: bf16[2,16,64], index: 0, kind: input, shape index: {}]   ;;  %s630_s1 = inlined_call_operand.vmem [shape: bf16[2,64], index: 1, kind: input, shape index: {}]   ;;  %s631_s2 = inlined_call_operand.vmem [shape: bf16[64,32], index: 2, kind: input, shape index: {}]   ;;  %s632_s3 = inlined_call_operand.vmem [shape: bf16[64,32], index: 3, kind: input, shape index: {}]   ;;  %s633_s4 = inlined_call_operand.vmem [shape: f32[1,32], index: 4, kind: input, shape index: {}]   ;;  %s634_s5 = inlined_call_operand.vmem [shape: bf16[1,32], index: 5, kind: input, shape index: {}]   ;;  %s635_s6 = inlined_call_operand.vmem [shape: f32[16,128], index: 6, kind: input, shape index: {}]   ;;  %s636_s7 = inlined_call_operand.hbm [shape: f32[2,128], index: 7, kind: output, shape index: {}]  }
   0x1   :  { %v483_v0 = vld [vmem:[%s632_s3] sm:$0xff]   ;;  %444 = vmatprep.subr.bf16.mxu0 %v525_v1  ;;  %v485_v3 = vld [vmem:[%s632_s3 + $0x8] sm:$0xff]   ;;  %452 = vmatprep.mubr.msk.bf16.mxu0 %vm526_vm0, %v525_v1  ;;  %v488_v5 = vld [vmem:[%s631_s2 + $0x10] sm:$0xff]  }
   0x2   :  { %v484_v2 = vld [vmem:[%s631_s2] sm:$0xff]   ;;  %445 = vmatpush3.bf16.msra.mxu0 %v483_v0  ;;  %v486_v4 = vld [vmem:[%s631_s2 + $0x8] sm:$0xff]   ;;  %v487_v6 = vld [vmem:[%s632_s3 + $0x10] sm:$0xff]  }
   0x3   :  { %446 = vmatprep.subr.bf16.mxu0 %v525_v1  ;;  %456 = vmatprep.subr.bf16.mxu1 %v484_v2  ;;  %v490_v7 = vld [vmem:[%s631_s2 + $0x18] sm:$0xff]   ;;  %v491_v8 = vld [vmem:[%s629_s0] sm:$0xff]  }
   0x4   :  { %457 = vmatpush3.bf16.msra.mxu1 %v484_v2  ;;  %v489_v9 = vld [vmem:[%s632_s3 + $0x18] sm:$0xff]  }
   0x5   :  { %458 = vmatprep.subr.bf16.mxu1 %v486_v4 }
   0x6   :  { %447 = vmatpush3.bf16.msra.mxu0 %v485_v3 }
   0x7   :  { %448 = vmatprep.subr.bf16.mxu0 %v525_v1 }
   0x8   :  { %459 = vmatpush3.bf16.msra.mxu1 %v486_v4 }
   0x9   :  { %460 = vmatprep.subr.bf16.mxu1 %v488_v5 }
   0xa   :  { %449 = vmatpush3.bf16.msra.mxu0 %v487_v6 }
   0xb   :  { %12 = vsyncpa [#allocation3], 0  ;;  %450 = vmatprep.subr.bf16.mxu0 %v525_v1  ;;  %464 = vmatprep.mubr.msk.bf16.mxu1 %vm68_vm1, %v491_v8  ;;  %v28_v10 = vld [vmem:[%s630_s1] sm:$0x1]  ;;  %v492_v11 = vld [vmem:[%s629_s0 + $0x8] sm:$0xff]   ;;  %v217_v14 = vlaneseq  ;;  %vm268_vm2 = vcmask 261120  }
   0xc   :  { %461 = vmatpush3.bf16.msra.mxu1 %v488_v5  ;;  %v527_v12 = vmov 1966171168   ;;  %v415_v17 = vld [vmem:[%s633_s4] ss:$0 sm:$0xff]  ;;  %vm297_vm3 = vcmask 130112   ;;  %vm308_vm4 = vcmask 1041409  }
   0xd   :  { %462 = vmatprep.subr.bf16.mxu1 %v490_v7  ;;  %v215_v13 = vunpack.c.l.s4 %v527_v12  ;;  %v218_v16 = vshrl.u32 %v217_v14, 7  ;;  %v254_v41 = vld [vmem:[%s634_s5] sm:$0x1]  ;;  %v282_v56 = vand.u32 127, %v217_v14  ;;  %vm312_vm6 = vcmask 123904   ;;  %s529_s25 = smov [#allocation2]  }
   0xe   :  { %451 = vmatpush3.bf16.msra.mxu0 %v489_v9  ;;  %v256_v42 = vpack.i.b16 %v254_v41, %v254_v41  ;;  %v324_v14 = vld [vmem:[%s635_s6] sm:$0xff]  ;;  %vm326_vm7 = vcmask 130048   ;;  %s407_s26 = sshll.u32 %s529_s25, 4  ;;  %s408_s26 = int_to_ptr.vmem [resolvable:$true] %s407_s26 }
   0xf   :  { %v216_v15 = vunpack.c.0.s8 %v215_v13  ;;  %v238_v26 = vsub.s32 0, %v218_v16  ;;  %v292_v57 = vadd.s32 4294967288, %v282_v56  ;;  %v290_v61 = vsub.s32 %v282_v56, %v218_v16  ;;  %s501_s27 = scalar_lea.vmem %s408_s26, 32  ;;  %p506_p1 = scmp.lt.s32.totalorder %s408_s26, %s408_s26 }
  0x10   :  { %463 = vmatpush3.bf16.msra.mxu1 %v490_v7  ;;  %vm283_vm5 = vcmp.lt.s32.totalorder %v282_v56, 8  ;;  %p502_p0 = scmp.ne.s32.totalorder %s408_s26, %s501_s27  ;;  %p507_p2 = scmp.lt.s32.totalorder %s501_s27, %s501_s27 }
  0x11   :  { %453 = vmatmul.mubr.msk.bf16.vlgmr.msra.gmra.mrb[0].mxu0 %vm68_vm1, %v28_v10  ;;  %v219_v18 = vsub.s32 %v216_v15, %v218_v16  ;;  %v261_v43 = vrot.slane %v256_v42, %v238_v26  ;;  %v295_v59 = vsub.s32 %v292_v57, %v218_v16  ;;  %v325_v15 = vld [vmem:[%s635_s6 + $0x8] sm:$0xff] }
  0x12   :  { %472 = vmatprep.mubr.msk.f32.mxu0 %vm526_vm0, %v525_v1  ;;  %v476_v16 = vpack.c.bf16 %v325_v15, %v324_v14  ;;  %p508_p3 = por %p507_p2, %p506_p1 }
  0x13   :  { %465 = vmatmul.mubr.msk.bf16.vlgmr.msra.gmra.mrb[0].mxu1 %vm68_vm1, %v492_v11 }
  0x14   :  { %p509_p4 = pnand %p508_p3, %p502_p0 }
  0xe4   :  { %v106_v19 = vpop.f32.mrb[0].mxu0 }
  0xe5   :  { %v107_v20 = vadd.f32 %v415_v17, %v106_v19  ;;  %v454_v21 = vpop.f32.mrb[1].mxu0  ;;  %v528_v17 = vmov 0.0|0.0  }
  0xe6   :  { %v109_v22 = vpop.f32.mrb[2].mxu0  ;;  %v466_v23 = vpop.f32.mrb[0].mxu1  ;;  %475 = vmatprep.subr.bf16.mxu0 %v528_v17 }
  0xe7   :  { %v220_v24 = vrot.slane %v107_v20, %v219_v18  ;;  %v455_v25 = vpop.f32.mrb[3].mxu0  ;;  %v198_v27 = vpop.f32.mrb[1].mxu1  ;;  %477 = vmatpush3.bf16.msra.mxu0 %v476_v16 }
  0xe8   :  { %v467_v28 = vpop.f32.mrb[2].mxu1 }
  0xe9   :  { %v221_v29 = vcombine.high %v220_v24, %v220_v24  ;;  %v228_v30 = vrot.slane %v220_v24, %v219_v18  ;;  %v201_v31 = vpop.f32.mrb[3].mxu1 }
  0xeb   :  { %v235_v32 = vrot.slane %v221_v29, %v219_v18  ;;  %v239_v33 = vrot.slane %v228_v30, %v238_v26 }
  0xed   :  { %v243_v34 = vrot.slane %v235_v32, %v238_v26  ;;  %v246_v35 = vadd.f32 %v239_v33, %v198_v27  ;;  %v247_v36 = vadd.f32 %v239_v33, %v201_v31 }
  0xef   :  { %v248_v37 = vadd.f32 %v466_v23, %v243_v34  ;;  %v249_v38 = vadd.f32 %v467_v28, %v243_v34  ;;  %v250_v39 = vpack.c.bf16 %v247_v36, %v246_v35 }
  0xf1   :  { %v251_v40 = vpack.c.bf16 %v249_v38, %v248_v37  ;;  %493 = vtanh.bf16 %v250_v39 }
  0xf3   :  { %495 = vtanh.bf16 %v251_v40 }
  0xfc   :  { %v494_v44 = vpop.eup %493 }
  0xfd   :  { %v262_v45 = vmul.bf16 %v494_v44, %v261_v43 }
  0xfe   :  { %v496_v46 = vpop.eup %495 }
  0xff   :  { %v264_v47 = vunpack.c.l.bf16 %v262_v45  ;;  %v263_v48 = vmul.bf16 %v496_v46, %v261_v43  ;;  %v265_v51 = vunpack.c.h.bf16 %v262_v45 }
 0x101   :  { %v269_v49 = vsel %vm268_vm2, %v264_v47, 0.0  ;;  %v266_v50 = vunpack.c.l.bf16 %v263_v48  ;;  %v267_v53 = vunpack.c.h.bf16 %v263_v48  ;;  %v272_v54 = vsel %vm268_vm2, %v265_v51, 0.0 }
 0x102   :  { %270 = vadd.xlane.f32.xlu0 %v269_v49 }
 0x103   :  { %v275_v52 = vsel %vm268_vm2, %v266_v50, 0.0  ;;  %v278_v55 = vsel %vm268_vm2, %v267_v53, 0.0 }
 0x104   :  { %276 = vadd.xlane.f32.xlu1 %v275_v52 }
 0x106   :  { %273 = vadd.xlane.f32.xlu0 %v272_v54 }
 0x108   :  { %279 = vadd.xlane.f32.xlu1 %v278_v55 }
 0x18f   :  { %v271_v58 = vpop.xlane.xlu0 %270 }
 0x190   :  { %v291_v1 = vrot.slane %v271_v58, %v290_v61 }
 0x191   :  { %v277_v60 = vpop.xlane.xlu1 %276 }
 0x192   :  { %v302_v2 = vrot.slane %v277_v60, %v290_v61 }
 0x193   :  { %v274_v62 = vpop.xlane.xlu0 %273 }
 0x194   :  { %v296_v63 = vrot.slane %v274_v62, %v295_v59 }
 0x195   :  { %v280_v0 = vpop.xlane.xlu1 %279 }
 0x196   :  { %v306_v3 = vrot.slane %v280_v0, %v295_v59  ;;  %v298_v4 = vsel %vm297_vm3, %v296_v63, %v291_v1 }
 0x198   :  { %v307_v5 = vsel %vm297_vm3, %v306_v3, %v302_v2 }
 0x199   :  { %v309_v6 = vsel %vm308_vm4, %v307_v5, %v298_v4 }
 0x19a   :  { %v311_v7 = vsel %vm283_vm5, %v309_v6, -1e+30 }
 0x19b   :  { %v313_v8 = vsel %vm312_vm6, %v311_v7, -inf }
 0x19c   :  { %314 = vmax.xlane.f32.xlu0 %v313_v8 }
 0x229   :  { %v315_v9 = vpop.xlane.xlu0 %314 }
 0x22a   :  { %v316_v10 = vsub.f32 %v311_v7, %v315_v9 }
 0x22c   :  { %v317_v11 = vmul.f32 1.442695, %v316_v10 }
 0x22e   :  { %497 = vpow2.f32 %v317_v11 }
 0x238   :  { %v498_v12 = vpop.eup %497 }
 0x239   :  { %v319_v13 = vsel %vm312_vm6, %v498_v12, 0.0 }
 0x23a   :  { %320 = vadd.xlane.f32.xlu1 %v319_v13 }
 0x2c7   :  { %v321_v18 = vpop.xlane.xlu1 %320 }
 0x2c8   :  { %499 = vrcp.f32 %v321_v18 }
 0x2d2   :  { %v500_v19 = vpop.eup %499 }
 0x2d3   :  { %v323_v20 = vmul.f32 %v500_v19, %v498_v12 }
 0x2d5   :  { %473 = vmatmul.mubr.msk.f32.vlgmr.msra.gmra.mrb[4].mxu0 %vm326_vm7, %v323_v20 }
 0x3a8   :  { %v396_v21 = vpop.f32.mrb[4].mxu0 }
 0x3a9   :  { %400 = vst [vmem:[#allocation2] sm:$0x3] %v396_v21  ;;  %v474_v22 = vpop.f32.mrb[5].mxu0 }
 0x3aa   :  { %512 = shalt.err (!%p509_p4)
}
 0x3ab   :  { %s513_s29 = scalar_lea.hbm %s636_s7, 32 }
 0x3ac   :  { %p514_p5 = scmp.ne.s32.totalorder %s636_s7, %s513_s29  ;;  %p517_p6 = scmp.lt.u32.totalorder %s513_s29, %s636_s7 }
 0x3ae   :  { %p519_p7 = pnand %p517_p6, %p514_p5 }
 0x3b0   :  { %522 = shalt.err (!%p519_p7)
}
 0x3b1   :  { %410 = dma.vmem_to_hbm [thread:$0]  %s408_s26, 32, %s636_s7, [#allocation3]  }
 0x3b2   :  { %523 = dma.done.wait [#allocation3], 32  }
 0x3b3   :  { %524 = vsyncadd [#allocation3], 4294967264 }
 0x3b4   :  { %414 = vsyncpa [#allocation3], 1 }

</bundles_post_ra>
